<compile_context>
chip_gen: v6e
topology: v6e:2x2x1
jax: 0.10.0
libtpu: 0.0.40
codegen_flags: <defaults>
</compile_context>

<pallas_src>
import functools

import jax
import jax.numpy as jnp
from jax.experimental import pallas as pl
from jax.experimental.pallas import tpu as pltpu  # noqa: F401  (TPU backend)

# Problem sizes consistent with the module's __init__ signature.
BATCH = 2
CHANNELS = 16      # graph nodes (EEG channels)
EEG_SIZE = 32      # encoded-EEG length (present in x, unused by the math)
EXTRA = 9          # the module slices features at eeg_size + 9
NFEAT = 8          # node feature size fed to gc1
NHID = 32          # hidden size
NCLASS = 4         # number of classes
DROPOUT = 0.5      # F.dropout is identity at inference


def _round_up(n: int, m: int) -> int:
    return ((n + m - 1) // m) * m


def _param_rows(nfeat: int, nhid: int):
    """Row offsets of each parameter inside the packed [rows, nhid] slab.

    Every segment start is a multiple of 8 so the in-kernel slices are
    sublane-aligned (no sublane shifts / relayout copies).
    """
    row_w1 = 0
    row_b1 = _round_up(row_w1 + nfeat, 8)
    row_w2 = _round_up(row_b1 + 1, 8)
    row_b2 = _round_up(row_w2 + nhid, 8)
    total = row_b2 + 1
    return row_b1, row_w2, row_b2, total


def pack_params(w1, b1, w2, b2):
    """Pack gc1/gc2 parameters into one f32 slab (done once, at model init)."""
    nfeat, nhid = w1.shape
    nclass = w2.shape[1]
    row_b1, row_w2, row_b2, total = _param_rows(nfeat, nhid)
    p = jnp.zeros((total, nhid), jnp.float32)
    p = p.at[0:nfeat, :].set(w1.astype(jnp.float32))
    p = p.at[row_b1, :].set(b1.reshape(nhid).astype(jnp.float32))
    p = p.at[row_w2:row_w2 + nhid, 0:nclass].set(w2.astype(jnp.float32))
    p = p.at[row_b2, 0:nclass].set(b2.reshape(nclass).astype(jnp.float32))
    return p


def graph_conv_stdp_kernel(feat_ref, adj_ref, params_ref, o_ref):
    """One invocation computes the whole batch.

    feat_ref   : [B*C, nfeat]   node features (already sliced in the wrapper)
    adj_ref    : [B*C, B*C]     block-diagonal precomputed STDP adjacency
    params_ref : [rows, nhid]   packed (w1 | b1 | w2 | b2), 8-aligned segments
    o_ref      : [B, C, nclass] log-softmax output
    """
    nfeat = feat_ref.shape[1]
    b, c, k = o_ref.shape                 # static at trace time
    nhid = params_ref.shape[1]
    row_b1, row_w2, row_b2, _ = _param_rows(nfeat, nhid)

    feat = feat_ref[...]                                     # [B*C, F]
    a_bd = adj_ref[...]                                      # [B*C, B*C]
    w1 = params_ref[0:nfeat, :]                              # [F, H]
    b1 = params_ref[row_b1:row_b1 + 1, :]                    # [1, H]
    w2 = params_ref[row_w2:row_w2 + nhid, 0:k]               # [H, K]
    b2 = params_ref[row_b2:row_b2 + 1, 0:k]                  # [1, K]

    # ---- gc1: relu(adj @ (feat @ W1) + b1), re-associated as (adj@feat)@W1 ----
    t1 = jnp.dot(a_bd, feat, preferred_element_type=jnp.float32)        # [B*C, F]
    h = jnp.maximum(
        jnp.dot(t1, w1, preferred_element_type=jnp.float32) + b1, 0.0)  # [B*C, H]
    # TODO(synk): F.dropout(h, p, training=True) (RNG masking) not implemented;
    # identity here (inference / eval mode).

    # ---- gc2: adj @ (h @ W2) + b2 ----
    s2 = jnp.dot(h, w2, preferred_element_type=jnp.float32)             # [B*C, K]
    logits = jnp.dot(a_bd, s2, preferred_element_type=jnp.float32) + b2  # [B*C, K]

    # ---- log_softmax over the channel axis, vectorized over the batch ----
    lg = logits.reshape(b, c, k)     # leading-dim regroup; no lane-layout change
    m = jnp.max(lg, axis=1, keepdims=True)
    z = lg - m
    lse = jnp.log(jnp.sum(jnp.exp(z), axis=1, keepdims=True))
    o_ref[...] = (z - lse).astype(o_ref.dtype)               # single store


@functools.partial(jax.jit, static_argnames=("eeg_size", "nclass"))
def graph_conv_stdp_with_adj(x, adjs, packed_params, *, eeg_size, nclass):
    """Forward pass of GraphConvStdpWithAdj (inference)."""
    batch, chans, d = x.shape
    nfeat = d - (eeg_size + 9)

    # Feature slice done here (XLA side) so the kernel DMA is small and aligned.
    feat = x[:, :, eeg_size + 9:].reshape(batch * chans, nfeat).astype(jnp.float32)

    # Block-diagonal adjacency: turns the per-batch graph matmuls into single
    # 2-D MXU dots over the whole batch.
    eye_b = jnp.eye(batch, dtype=jnp.float32)
    a_bd = (adjs.astype(jnp.float32)[:, :, None, :] *
            eye_b[:, None, :, None]).reshape(batch * chans, batch * chans)

    out = pl.pallas_call(
        graph_conv_stdp_kernel,
        out_shape=jax.ShapeDtypeStruct((batch, chans, nclass), jnp.float32),
        # No grid / BlockSpecs: single invocation, whole ~12 KB problem staged
        # into VMEM as one block.  (For large batches on v7x, add a "parallel"
        # batch grid axis so both TensorCores split the work.)
    )(feat, a_bd, packed_params)
    return out


if __name__ == "__main__":
    key = jax.random.PRNGKey(0)
    kx, ka, kw1, kb1, kw2, kb2 = jax.random.split(key, 6)

    D = EEG_SIZE + EXTRA + NFEAT
    # Input: [batch, channel, encoded_eeg + 9 extras + features]
    x = jax.random.normal(kx, (BATCH, CHANNELS, D), dtype=jnp.float32)

    # Precomputed STDP adjacency (module input): nonnegative + self loops,
    # row-normalized.
    raw = jax.random.uniform(ka, (BATCH, CHANNELS, CHANNELS), jnp.float32)
    raw = raw + jnp.eye(CHANNELS, dtype=jnp.float32)[None]
    adjs = raw / jnp.sum(raw, axis=-1, keepdims=True)

    # GraphConvolution parameters: uniform(-stdv, stdv), stdv = 1/sqrt(out_features).
    stdv1 = 1.0 / (NHID ** 0.5)
    w1 = jax.random.uniform(kw1, (NFEAT, NHID), jnp.float32, -stdv1, stdv1)
    b1 = jax.random.uniform(kb1, (1, NHID), jnp.float32, -stdv1, stdv1)
    stdv2 = 1.0 / (NCLASS ** 0.5)
    w2 = jax.random.uniform(kw2, (NHID, NCLASS), jnp.float32, -stdv2, stdv2)
    b2 = jax.random.uniform(kb2, (1, NCLASS), jnp.float32, -stdv2, stdv2)

    # Parameters are packed ONCE (model init), not per forward call.
    params = pack_params(w1, b1, w2, b2)

    out = graph_conv_stdp_with_adj(x, adjs, params,
                                   eeg_size=EEG_SIZE, nclass=NCLASS)
    out = jax.block_until_ready(out)

    # Pure-JAX reference of the same forward pass.
    feat_ref_in = x[:, :, EEG_SIZE + EXTRA:]
    h_ref = jax.nn.relu(jnp.einsum('bij,bjf,fh->bih', adjs, feat_ref_in, w1) + b1)
    logits_ref = jnp.einsum('bij,bjh,hk->bik', adjs, h_ref, w2) + b2
    ref = jax.nn.log_softmax(logits_ref, axis=1)

    assert out.shape == (BATCH, CHANNELS, NCLASS)
    assert bool(jnp.all(jnp.isfinite(out)))
    assert bool(jnp.allclose(out, ref, atol=2e-3, rtol=2e-3)), \
        float(jnp.max(jnp.abs(out - ref)))
    print("KERNEL_OK")
</pallas_src>

<mosaic_0001>
module attributes {stable_mosaic.version = 11 : i64} {
  func.func @graph_conv_stdp_kernel(%arg0: memref<32x8xf32, #tpu.memory_space<vmem>>, %arg1: memref<32x32xf32, #tpu.memory_space<vmem>>, %arg2: memref<49x32xf32, #tpu.memory_space<vmem>>, %arg3: memref<2x16x4xf32, #tpu.memory_space<vmem>>) attributes {dimension_semantics = [], scalar_prefetch = 0 : i64, scratch_operands = 0 : i64, tpu.core_type = #tpu.core_type<tc>} {
    %c0 = arith.constant 0 : index
    %c0_0 = arith.constant 0 : index
    %0 = vector.load %arg0[%c0, %c0_0] : memref<32x8xf32, #tpu.memory_space<vmem>>, vector<32x8xf32>
    %c0_1 = arith.constant 0 : index
    %c0_2 = arith.constant 0 : index
    %1 = vector.load %arg1[%c0_1, %c0_2] : memref<32x32xf32, #tpu.memory_space<vmem>>, vector<32x32xf32>
    %c0_3 = arith.constant 0 : index
    %c0_4 = arith.constant 0 : index
    %2 = vector.load %arg2[%c0_3, %c0_4] : memref<49x32xf32, #tpu.memory_space<vmem>>, vector<8x32xf32>
    %c8 = arith.constant 8 : index
    %c0_5 = arith.constant 0 : index
    %3 = vector.load %arg2[%c8, %c0_5] : memref<49x32xf32, #tpu.memory_space<vmem>>, vector<1x32xf32>
    %c16 = arith.constant 16 : index
    %c0_6 = arith.constant 0 : index
    %4 = vector.load %arg2[%c16, %c0_6] : memref<49x32xf32, #tpu.memory_space<vmem>>, vector<32x4xf32>
    %c48 = arith.constant 48 : index
    %c0_7 = arith.constant 0 : index
    %5 = vector.load %arg2[%c48, %c0_7] : memref<49x32xf32, #tpu.memory_space<vmem>>, vector<1x4xf32>
    %cst = arith.constant dense<0.000000e+00> : vector<32x8xf32>
    %6 = tpu.matmul %1, %0, %cst {dimension_numbers = #tpu.dot_dimension_numbers<[1], [0], [0], [1], [0, 0, 1, 1], [], []>} : vector<32x32xf32>, vector<32x8xf32>, vector<32x8xf32> -> vector<32x8xf32>
    %cst_8 = arith.constant dense<0.000000e+00> : vector<32x32xf32>
    %7 = tpu.matmul %6, %2, %cst_8 {dimension_numbers = #tpu.dot_dimension_numbers<[1], [0], [0], [1], [0, 0, 1, 1], [], []>} : vector<32x8xf32>, vector<8x32xf32>, vector<32x32xf32> -> vector<32x32xf32>
    %8 = vector.broadcast %3 : vector<1x32xf32> to vector<32x32xf32>
    %9 = arith.addf %7, %8 : vector<32x32xf32>
    %cst_9 = arith.constant 0.000000e+00 : f32
    %10 = vector.broadcast %cst_9 : f32 to vector<32x32xf32>
    %11 = arith.maximumf %9, %10 : vector<32x32xf32>
    %cst_10 = arith.constant dense<0.000000e+00> : vector<32x4xf32>
    %12 = tpu.matmul %11, %4, %cst_10 {dimension_numbers = #tpu.dot_dimension_numbers<[1], [0], [0], [1], [0, 0, 1, 1], [], []>} : vector<32x32xf32>, vector<32x4xf32>, vector<32x4xf32> -> vector<32x4xf32>
    %cst_11 = arith.constant dense<0.000000e+00> : vector<32x4xf32>
    %13 = tpu.matmul %1, %12, %cst_11 {dimension_numbers = #tpu.dot_dimension_numbers<[1], [0], [0], [1], [0, 0, 1, 1], [], []>} : vector<32x32xf32>, vector<32x4xf32>, vector<32x4xf32> -> vector<32x4xf32>
    %14 = vector.broadcast %5 : vector<1x4xf32> to vector<32x4xf32>
    %15 = arith.addf %13, %14 : vector<32x4xf32>
    %16 = vector.shape_cast %15 : vector<32x4xf32> to vector<2x16x4xf32>
    %cst_12 = arith.constant dense<0xFF800000> : vector<2x4xf32>
    %17 = vector.multi_reduction <maximumf>, %16, %cst_12 [1] : vector<2x16x4xf32> to vector<2x4xf32>
    %18 = vector.shape_cast %17 : vector<2x4xf32> to vector<2x1x4xf32>
    %19 = vector.broadcast %18 : vector<2x1x4xf32> to vector<2x16x4xf32>
    %20 = arith.subf %16, %19 : vector<2x16x4xf32>
    %21 = math.exp %20 : vector<2x16x4xf32>
    %cst_13 = arith.constant dense<0.000000e+00> : vector<2x4xf32>
    %22 = vector.multi_reduction <add>, %21, %cst_13 [1] : vector<2x16x4xf32> to vector<2x4xf32>
    %23 = vector.shape_cast %22 : vector<2x4xf32> to vector<2x1x4xf32>
    %24 = math.log %23 : vector<2x1x4xf32>
    %25 = vector.broadcast %24 : vector<2x1x4xf32> to vector<2x16x4xf32>
    %26 = arith.subf %20, %25 : vector<2x16x4xf32>
    %c0_14 = arith.constant 0 : index
    %c0_15 = arith.constant 0 : index
    %c0_16 = arith.constant 0 : index
    %27 = vector.load %arg3[%c0_14, %c0_15, %c0_16] : memref<2x16x4xf32, #tpu.memory_space<vmem>>, vector<2x16x4xf32>
    tpu.vector_store %arg3[%c0_14, %c0_15, %c0_16], %26 {strides = array<i32>} : memref<2x16x4xf32, #tpu.memory_space<vmem>>, vector<2x16x4xf32>,
    return
  }
}

</mosaic_0001>

<bundles_post_ra>
// kernel: graph_conv_stdp_with_adj.1
= control target key start
LH: loop header
LB: loop body
LE: loop exit
PB: predicated region body
PF: predicated region fallthrough
CT: control target
= control target key end

     0   :  { %vm29_vm0 = vcmask 261120   ;;  %vm131_vm1 = vcmask 64512   ;;  %vm419_vm2 = vcmask 31744   ;;  %s710_s0 = inlined_call_operand.vmem [shape: f32[32,8], index: 0, kind: input, shape index: {}]   ;;  %s711_s1 = inlined_call_operand.vmem [shape: f32[32,32], index: 1, kind: input, shape index: {}]   ;;  %s712_s2 = inlined_call_operand.vmem [shape: f32[49,32], index: 2, kind: input, shape index: {}]   ;;  %s713_s3 = inlined_call_operand.vmem [shape: f32[2,16,4], index: 3, kind: output, shape index: {}]  }
   0x1   :  { %v17_v0 = vld [vmem:[%s710_s0 + $0x18] sm:$0xff]  ;;  %v16_v1 = vld [vmem:[%s710_s0 + $0x10] sm:$0xff]  ;;  %v18_v2 = vld [vmem:[%s711_s1] sm:$0xff] }
   0x2   :  { %531 = vmatprep.subr.mxu0 %v17_v0  ;;  %v15_v3 = vld [vmem:[%s710_s0 + $0x8] sm:$0xff]  ;;  %539 = vmatprep.mubr.msk.f32.mxu0 %vm29_vm0, %v18_v2  ;;  %v14_v4 = vld [vmem:[%s710_s0] sm:$0xff]  ;;  %v20_v6 = vld [vmem:[%s711_s1 + $0x10] sm:$0xff] }
   0x3   :  { %532 = vmatpush3.msra.mxu0 %v17_v0  ;;  %v640_v5 = vld [vmem:[%s711_s1 + $0x8] sm:$0xff]  ;;  %v651_v7 = vld [vmem:[%s711_s1 + $0x18] sm:$0xff]  ;;  %v22_v8 = vld [vmem:[%s712_s2] sm:$0xff] }
   0x4   :  { %533 = vmatprep.subr.mxu0 %v16_v1  ;;  %545 = vmatprep.subr.mxu1 %v22_v8  ;;  %v27_v13 = vld [vmem:[%s712_s2 + $0x28] sm:$0xff]  ;;  %v26_v14 = vld [vmem:[%s712_s2 + $0x20] sm:$0xff]  ;;  %v25_v15 = vld [vmem:[%s712_s2 + $0x18] sm:$0xff] }
   0x5   :  { %534 = vmatpush3.msra.mxu0 %v16_v1  ;;  %546 = vmatpush3.msra.mxu1 %v22_v8  ;;  %v24_v16 = vld [vmem:[%s712_s2 + $0x10] sm:$0xff]  ;;  %v488_v17 = vld [vmem:[%s712_s2 + $0x8] ss:$0 sm:$0xff] }
   0x6   :  { %535 = vmatprep.subr.mxu0 %v15_v3  ;;  %553 = vmatprep.subr.mxu1 %v27_v13  ;;  %v497_v34 = vld [vmem:[%s712_s2 + $0x30] ss:$0 sm:$0xff] }
   0x7   :  { %536 = vmatpush3.msra.mxu0 %v15_v3 }
   0x8   :  { %537 = vmatprep.subr.mxu0 %v14_v4 }
   0x9   :  { %538 = vmatpush3.msra.mxu0 %v14_v4 }
   0xa   :  { %540 = vmatmul.mubr.msk.f32.vlgmr.msra.gmra.mxu0 %vm29_vm0, %v640_v5 }
   0xb   :  { %542 = vmatprep.mubr.msk.f32.mxu0 %vm29_vm0, %v20_v6 }
   0xe   :  { %543 = vmatmul.mubr.msk.f32.gmra.mxu0 %vm29_vm0, %v651_v7 }
   0xf   :  { %575 = vmatprep.mubr.msk.f32.mxu0 %vm29_vm0, %v18_v2 }
  0xca   :  { %v541_v9 = vpop.f32.mrf.mxu0 }
  0xcc   :  { %v108_v10 = vpop.f32.mrf.mxu0 }
  0xcd   :  { %547 = vmatprep.mubr.msk.f32.mxu1 %vm131_vm1, %v108_v10 }
  0xce   :  { %v544_v11 = vpop.f32.mrf.mxu0  ;;  %548 = vmatmul.mubr.msk.f32.vlgmr.msra.gmra.mxu1 %vm131_vm1, %v541_v9 }
  0xcf   :  { %554 = vmatpush3.msra.mxu1 %v27_v13 }
  0xd0   :  { %v118_v12 = vpop.f32.mrf.mxu0  ;;  %555 = vmatprep.subr.mxu1 %v26_v14 }
  0xd1   :  { %550 = vmatprep.mubr.msk.f32.mxu1 %vm131_vm1, %v118_v12  ;;  %556 = vmatpush3.msra.mxu1 %v26_v14 }
  0xd2   :  { %551 = vmatmul.mubr.msk.f32.gmra.mxu1 %vm131_vm1, %v544_v11  ;;  %557 = vmatprep.subr.mxu1 %v25_v15 }
  0xd3   :  { %558 = vmatpush3.msra.mxu1 %v25_v15 }
  0xd4   :  { %559 = vmatprep.subr.mxu1 %v24_v16 }
  0xd5   :  { %560 = vmatpush3.msra.mxu1 %v24_v16 }
 0x18e   :  { %v549_v18 = vpop.f32.mrf.mxu1 }
 0x18f   :  { %v216_v19 = vadd.f32 %v549_v18, %v488_v17 }
 0x190   :  { %v210_v20 = vpop.f32.mrf.mxu1 }
 0x191   :  { %v211_v21 = vadd.f32 %v488_v17, %v210_v20  ;;  %v230_v24 = vmax.f32 %v216_v19, 0.0 }
 0x192   :  { %v552_v22 = vpop.f32.mrf.mxu1 }
 0x193   :  { %v229_v23 = vmax.f32 %v211_v21, 0.0  ;;  %v226_v25 = vadd.f32 %v552_v22, %v488_v17 }
 0x194   :  { %v220_v26 = vpop.f32.mrf.mxu1 }
 0x195   :  { %v221_v27 = vadd.f32 %v488_v17, %v220_v26  ;;  %561 = vmatprep.mubr.msk.f32.mxu1 %vm29_vm0, %v229_v23  ;;  %v232_v29 = vmax.f32 %v226_v25, 0.0 }
 0x196   :  { %562 = vmatmul.mubr.msk.f32.vlgmr.msra.gmra.mxu1 %vm29_vm0, %v230_v24 }
 0x197   :  { %v231_v28 = vmax.f32 %v221_v27, 0.0 }
 0x199   :  { %564 = vmatprep.mubr.msk.f32.mxu1 %vm29_vm0, %v231_v28 }
 0x19a   :  { %565 = vmatmul.mubr.msk.f32.gmra.mxu1 %vm29_vm0, %v232_v29 }
 0x19b   :  { %578 = vmatprep.mubr.msk.f32.mxu1 %vm29_vm0, %v20_v6 }
 0x256   :  { %v563_v30 = vpop.f32.mrf.mxu1 }
 0x258   :  { %v311_v31 = vpop.f32.mrf.mxu1 }
 0x25a   :  { %v566_v32 = vpop.f32.mrf.mxu1 }
 0x25b   :  { %567 = vmatprep.subr.mxu0 %v566_v32  ;;  %581 = vmatprep.subr.mxu1 %v566_v32 }
 0x25c   :  { %v321_v33 = vpop.f32.mrf.mxu1  ;;  %568 = vmatpush3.msra.mxu0 %v566_v32  ;;  %585 = vmatpush3.msra.mxu1 %v566_v32 }
 0x25d   :  { %569 = vmatprep.subr.mxu0 %v321_v33  ;;  %582 = vmatprep.subr.mxu1 %v321_v33 }
 0x25e   :  { %570 = vmatpush3.msra.mxu0 %v321_v33  ;;  %586 = vmatpush3.msra.mxu1 %v321_v33 }
 0x25f   :  { %571 = vmatprep.subr.mxu0 %v563_v30  ;;  %583 = vmatprep.subr.mxu1 %v563_v30 }
 0x260   :  { %572 = vmatpush3.msra.mxu0 %v563_v30  ;;  %587 = vmatpush3.msra.mxu1 %v563_v30 }
 0x261   :  { %573 = vmatprep.subr.mxu0 %v311_v31  ;;  %584 = vmatprep.subr.mxu1 %v311_v31 }
 0x262   :  { %574 = vmatpush3.msra.mxu0 %v311_v31  ;;  %588 = vmatpush3.msra.mxu1 %v311_v31 }
 0x263   :  { %576 = vmatmul.mubr.msk.f32.vlgmr.msra.gmra.mxu0 %vm29_vm0, %v640_v5  ;;  %579 = vmatmul.mubr.msk.f32.vlgmr.msra.gmra.mxu1 %vm29_vm0, %v651_v7 }
 0x323   :  { %v577_v35 = vpop.f32.mrf.mxu0  ;;  %v580_v36 = vpop.f32.mrf.mxu1 }
 0x324   :  { %v406_v37 = vadd.f32 %v577_v35, %v497_v34  ;;  %v416_v38 = vadd.f32 %v580_v36, %v497_v34 }
 0x325   :  { %v400_v39 = vpop.f32.mrf.mxu0  ;;  %v410_v40 = vpop.f32.mrf.mxu1 }
 0x326   :  { %v401_v41 = vadd.f32 %v497_v34, %v400_v39  ;;  %v411_v42 = vadd.f32 %v497_v34, %v410_v40  ;;  %v421_v43 = vsel %vm419_vm2, %v406_v37, -inf  ;;  %v430_v44 = vsel %vm419_vm2, %v416_v38, -inf }
 0x328   :  { %v420_v45 = vsel %vm419_vm2, %v401_v41, -inf  ;;  %v429_v46 = vsel %vm419_vm2, %v411_v42, -inf }
 0x329   :  { %v422_v47 = vmax.f32 %v420_v45, %v421_v43  ;;  %v431_v48 = vmax.f32 %v429_v46, %v430_v44 }
 0x32b   :  { %v423_v49 = vrot.slane %v422_v47, 4  ;;  %v432_v50 = vrot.slane %v431_v48, 4 }
 0x32d   :  { %v424_v51 = vmax.f32 %v422_v47, %v423_v49  ;;  %v433_v52 = vmax.f32 %v431_v48, %v432_v50 }
 0x32f   :  { %v425_v53 = vrot.slane %v424_v51, 2  ;;  %v434_v54 = vrot.slane %v433_v52, 2 }
 0x331   :  { %v426_v55 = vmax.f32 %v424_v51, %v425_v53  ;;  %v435_v56 = vmax.f32 %v433_v52, %v434_v54 }
 0x333   :  { %v427_v57 = vrot.slane %v426_v55, 1  ;;  %v436_v58 = vrot.slane %v435_v56, 1 }
 0x335   :  { %v428_v59 = vmax.f32 %v426_v55, %v427_v57  ;;  %v437_v60 = vmax.f32 %v435_v56, %v436_v58 }
 0x337   :  { %v438_v61 = vsub.f32 %v401_v41, %v428_v59  ;;  %v439_v62 = vsub.f32 %v406_v37, %v428_v59  ;;  %v440_v63 = vsub.f32 %v411_v42, %v437_v60  ;;  %v441_v0 = vsub.f32 %v416_v38, %v437_v60 }
 0x339   :  { %v442_v1 = vmul.f32 1.442695, %v438_v61  ;;  %v444_v2 = vmul.f32 1.442695, %v439_v62  ;;  %v446_v3 = vmul.f32 1.442695, %v440_v63 }
 0x33a   :  { %v448_v4 = vmul.f32 1.442695, %v441_v0 }
 0x33b   :  { %589 = vpow2.f32 %v442_v1 }
 0x33c   :  { %591 = vpow2.f32 %v444_v2 }
 0x33d   :  { %593 = vpow2.f32 %v446_v3 }
 0x33e   :  { %595 = vpow2.f32 %v448_v4 }
 0x348   :  { %v590_v5 = vpop.eup %589 }
 0x349   :  { %v592_v6 = vpop.eup %591  ;;  %v450_v7 = vsel %vm419_vm2, %v590_v5, 0.0 }
 0x34a   :  { %v594_v8 = vpop.eup %593  ;;  %v451_v9 = vsel %vm419_vm2, %v592_v6, 0.0 }
 0x34b   :  { %v596_v10 = vpop.eup %595  ;;  %v452_v11 = vadd.f32 %v451_v9, %v450_v7  ;;  %v459_v12 = vsel %vm419_vm2, %v594_v8, 0.0 }
 0x34c   :  { %v460_v13 = vsel %vm419_vm2, %v596_v10, 0.0 }
 0x34d   :  { %v453_v14 = vrot.slane %v452_v11, 4  ;;  %v461_v15 = vadd.f32 %v460_v13, %v459_v12 }
 0x34f   :  { %v454_v16 = vadd.f32 %v453_v14, %v452_v11  ;;  %v462_v17 = vrot.slane %v461_v15, 4 }
 0x351   :  { %v455_v18 = vrot.slane %v454_v16, 2  ;;  %v463_v19 = vadd.f32 %v462_v17, %v461_v15 }
 0x353   :  { %v456_v20 = vadd.f32 %v455_v18, %v454_v16  ;;  %v464_v21 = vrot.slane %v463_v19, 2 }
 0x355   :  { %v457_v22 = vrot.slane %v456_v20, 1  ;;  %v465_v23 = vadd.f32 %v464_v21, %v463_v19 }
 0x357   :  { %v458_v24 = vadd.f32 %v457_v22, %v456_v20  ;;  %v466_v25 = vrot.slane %v465_v23, 1 }
 0x359   :  { %597 = vlog2.f32 %v458_v24  ;;  %v467_v26 = vadd.f32 %v466_v25, %v465_v23 }
 0x35b   :  { %599 = vlog2.f32 %v467_v26 }
 0x366   :  { %v598_v27 = vpop.eup %597 }
 0x367   :  { %v469_v28 = vmul.f32 0.6931472, %v598_v27 }
 0x368   :  { %v600_v29 = vpop.eup %599 }
 0x369   :  { %v472_v30 = vsub.f32 %v438_v61, %v469_v28  ;;  %v473_v31 = vsub.f32 %v439_v62, %v469_v28  ;;  %v471_v32 = vmul.f32 0.6931472, %v600_v29 }
 0x36b   :  { %476 = vst.msk [vmem:[%s713_s3] sm:$0xff] %vm419_vm2, %v472_v30  ;;  %477 = vst.msk [vmem:[%s713_s3 + $0x8] sm:$0xff] %vm419_vm2, %v473_v31  ;;  %v474_v33 = vsub.f32 %v440_v63, %v471_v32  ;;  %v475_v34 = vsub.f32 %v441_v0, %v471_v32 }
 0x36d   :  { %478 = vst.msk [vmem:[%s713_s3 + $0x10] sm:$0xff] %vm419_vm2, %v474_v33  ;;  %479 = vst.msk [vmem:[%s713_s3 + $0x18] sm:$0xff] %vm419_vm2, %v475_v34 }

</bundles_post_ra>
